<compile_context>
chip_gen: v6e
topology: v6e:2x2x1
jax: 0.10.0
libtpu: 0.0.40
codegen_flags: <defaults>
</compile_context>

<pallas_src>
import functools

import jax
import jax.numpy as jnp
from jax import lax
from jax.experimental import pallas as pl
from jax.experimental.pallas import tpu as pltpu

EPS = 1e-5


def _round_up(x, m):
    return ((x + m - 1) // m) * m


def _pick_vmem_limit():
    """Generation-aware scoped-VMEM limit (v7x: 64 MiB physical, v5e/v6e: 128 MiB)."""
    try:
        cap = int(getattr(pltpu.get_tpu_info(), "vmem_capacity_bytes"))
    except Exception:  # interpret mode / older API -> conservative default
        cap = 128 * 1024 * 1024
    return max(16 * 1024 * 1024, min(int(cap * 0.45), 96 * 1024 * 1024))


VMEM_LIMIT = _pick_vmem_limit()


# ---------------------------------------------------------------------------
# Kernel 1: per-plane 3x3x3 conv (stride 1) with fused prev-BN/ReLU/mask and
# fused per-channel batch statistics.
#   grid = (N, D, 3):  kd (innermost, "arbitrary") reads the neighbouring
#   depth plane; the f32 accumulator lives in VMEM across the 3 kd steps.
# ---------------------------------------------------------------------------
def _shift_rows(a, s):
    """b[r] = a[r + s] along axis 0, zero-filled at the edges (s is static)."""
    if s == 0:
        return a
    fill = jnp.zeros((abs(s), a.shape[1]), a.dtype)
    if s > 0:
        return jnp.concatenate([a[s:, :], fill], axis=0)
    return jnp.concatenate([fill, a[:s, :]], axis=0)


def _tap_conv_kernel(x_ref, w_ref, sc_ref, sh_ref, mask_ref,
                     y_ref, ssum_ref, ssq_ref, acc_ref,
                     *, wp, din, apply_relu):
    o = pl.program_id(1)
    kd = pl.program_id(2)

    @pl.when(kd == 0)
    def _init():
        acc_ref[...] = jnp.zeros_like(acc_ref)

    # Depth-padding semantics: taps that read outside [0, din) contribute zero.
    d_in = o + kd - 1
    gate = jnp.where(jnp.logical_and(d_in >= 0, d_in < din), 1.0, 0.0)

    # Fused input transform: previous-layer BN (+ReLU) + in-plane zero-pad mask.
    xin = x_ref[0, 0].astype(jnp.float32)                 # (L, Cs)
    xin = xin * sc_ref[...] + sh_ref[...]
    if apply_relu:
        xin = jnp.maximum(xin, 0.0)
    xin = xin * (mask_ref[...] * gate)
    xb = xin.astype(jnp.bfloat16)                         # single full-plane cast

    # Group the 3 kw taps along channels -> every dot has K = 3*Cs.
    xcat = jnp.concatenate(
        [_shift_rows(xb, -1), xb, _shift_rows(xb, 1)], axis=-1)

    acc = acc_ref[...]
    for kh in range(3):                                   # 3 dots, 8-aligned row shifts
        lhs = _shift_rows(xcat, (kh - 1) * wp)
        acc = acc + jnp.dot(lhs, w_ref[kd * 3 + kh],
                            preferred_element_type=jnp.float32)
    acc_ref[...] = acc

    @pl.when(kd == pl.num_programs(2) - 1)
    def _finalize():
        yq = acc_ref[...].astype(y_ref.dtype)
        y_ref[0, 0] = yq
        # Stats over the bf16-rounded values actually consumed downstream,
        # masked to valid (interior) output positions only.
        yv = yq.astype(jnp.float32) * mask_ref[...]
        ssum_ref[...] = jnp.sum(yv, axis=0).reshape(1, 1, 1, -1)
        ssq_ref[...] = jnp.sum(yv * yv, axis=0).reshape(1, 1, 1, -1)


def tap_conv3d(x_slab, mask, wp_pad, w9, in_scale, in_shift, apply_relu):
    """Stride-1 pad-1 3x3x3 conv over a per-plane slab (N, D, Hp*Wp_pad, Cs)."""
    N, Din, L, Cs = x_slab.shape
    _, K3, Cp = w9.shape

    kern = functools.partial(_tap_conv_kernel, wp=wp_pad, din=Din,
                             apply_relu=apply_relu)

    def x_index(n, o, kd):
        d = jnp.maximum(jnp.minimum(o + kd - 1, Din - 1), 0)
        return (n, d, 0, 0)

    flops = 2 * 3 * 3 * N * Din * L * K3 * Cp
    bytes_acc = 3 * x_slab.size * 2 + N * Din * L * Cp * 2 + w9.size * 2

    y, ssum, ssq = pl.pallas_call(
        kern,
        out_shape=(jax.ShapeDtypeStruct((N, Din, L, Cp), jnp.bfloat16),
                   jax.ShapeDtypeStruct((N, Din, 1, Cp), jnp.float32),
                   jax.ShapeDtypeStruct((N, Din, 1, Cp), jnp.float32)),
        grid=(N, Din, 3),
        in_specs=[
            pl.BlockSpec((1, 1, L, Cs), x_index),
            # TODO(synk): the resident weight block is still double-buffered;
            # pl.Buffered(1) / a one-time DMA would reclaim that VMEM on v7x.
            pl.BlockSpec((9, K3, Cp), lambda n, o, kd: (0, 0, 0)),
            pl.BlockSpec((1, Cs), lambda n, o, kd: (0, 0)),
            pl.BlockSpec((1, Cs), lambda n, o, kd: (0, 0)),
            pl.BlockSpec((L, 1), lambda n, o, kd: (0, 0)),
        ],
        out_specs=(pl.BlockSpec((1, 1, L, Cp), lambda n, o, kd: (n, o, 0, 0)),
                   pl.BlockSpec((1, 1, 1, Cp), lambda n, o, kd: (n, o, 0, 0)),
                   pl.BlockSpec((1, 1, 1, Cp), lambda n, o, kd: (n, o, 0, 0))),
        scratch_shapes=[pltpu.VMEM((L, Cp), jnp.float32)],
        compiler_params=pltpu.CompilerParams(
            dimension_semantics=("parallel", "parallel", "arbitrary"),
            vmem_limit_bytes=VMEM_LIMIT),
        cost_estimate=pl.CostEstimate(flops=flops, transcendentals=0,
                                      bytes_accessed=bytes_acc),
    )(x_slab, w9, in_scale, in_shift, mask)
    return y, jnp.sum(ssum, axis=(0, 1))[0], jnp.sum(ssq, axis=(0, 1))[0]


# ---------------------------------------------------------------------------
# Kernel 2: K-tiled matmul with fused per-channel stats (strided conv1 /
# 1x1x1 shortcut).  f32 VMEM accumulator, M axis parallel, K axis arbitrary.
# NOTE: per-channel stats rely on any M-padding rows of `a` being zero; the
#       stats count (number of valid rows) is supplied separately by callers.
# ---------------------------------------------------------------------------
def _matmul_stats_kernel(a_ref, b_ref, y_ref, ssum_ref, ssq_ref, acc_ref):
    k = pl.program_id(1)

    @pl.when(k == 0)
    def _init():
        acc_ref[...] = jnp.zeros_like(acc_ref)

    acc_ref[...] += jnp.dot(a_ref[...], b_ref[...],
                            preferred_element_type=jnp.float32)

    @pl.when(k == pl.num_programs(1) - 1)
    def _finalize():
        yq = acc_ref[...].astype(y_ref.dtype)
        y_ref[...] = yq
        accq = yq.astype(jnp.float32)
        ssum_ref[0] = jnp.sum(accq, axis=0, keepdims=True)
        ssq_ref[0] = jnp.sum(accq * accq, axis=0, keepdims=True)


def matmul_stats(a, b, tm=512, tk=512):
    """a: (M, K), b: (K, Cout[mult of 128]) -> bf16 (M, Cout) + channel sum/sumsq."""
    M, K = a.shape
    _, Cout = b.shape
    tm = min(tm, _round_up(M, 8))
    Mp = _round_up(M, tm)
    if K <= tk:
        tk, Kp = K, K
    else:
        Kp = _round_up(K, tk)
    a = jnp.pad(a, ((0, Mp - M), (0, Kp - K))).astype(jnp.bfloat16)
    b = jnp.pad(b, ((0, Kp - K), (0, 0))).astype(jnp.bfloat16)
    gm, gk = Mp // tm, Kp // tk
    flops = 2 * Mp * Kp * Cout
    bytes_acc = Mp * Kp * 2 + Kp * Cout * 2 + Mp * Cout * 2
    y, ssum, ssq = pl.pallas_call(
        _matmul_stats_kernel,
        out_shape=(jax.ShapeDtypeStruct((Mp, Cout), jnp.bfloat16),
                   jax.ShapeDtypeStruct((gm, 1, Cout), jnp.float32),
                   jax.ShapeDtypeStruct((gm, 1, Cout), jnp.float32)),
        grid=(gm, gk),
        in_specs=[pl.BlockSpec((tm, tk), lambda i, k: (i, k)),
                  pl.BlockSpec((tk, Cout), lambda i, k: (k, 0))],
        out_specs=(pl.BlockSpec((tm, Cout), lambda i, k: (i, 0)),
                   pl.BlockSpec((1, 1, Cout), lambda i, k: (i, 0, 0)),
                   pl.BlockSpec((1, 1, Cout), lambda i, k: (i, 0, 0))),
        scratch_shapes=[pltpu.VMEM((tm, Cout), jnp.float32)],
        compiler_params=pltpu.CompilerParams(
            dimension_semantics=("parallel", "arbitrary"),
            vmem_limit_bytes=VMEM_LIMIT),
        cost_estimate=pl.CostEstimate(flops=flops, transcendentals=0,
                                      bytes_accessed=bytes_acc),
    )(a, b)
    return y[:M], jnp.sum(ssum, axis=0)[0], jnp.sum(ssq, axis=0)[0]


# ---------------------------------------------------------------------------
# Kernel 3: fused BN2 + shortcut-BN + residual add + ReLU (per-plane tiles)
# ---------------------------------------------------------------------------
def _fuse_kernel(y_ref, s2_ref, b2_ref, sc_ref, ss_ref, bs_ref, o_ref):
    y = y_ref[0, 0].astype(jnp.float32) * s2_ref[...] + b2_ref[...]
    s = sc_ref[0, 0].astype(jnp.float32) * ss_ref[...] + bs_ref[...]
    o_ref[0, 0] = jnp.maximum(y + s, 0.0)


def fuse_bn_add_relu(y2, s2, b2, sc, ss, bs):
    # TODO(synk): still writes full padded planes in f32; an interior-only,
    # bf16 output spec would save roughly one HBM pass over the result.
    N, Dn, L, C = y2.shape
    return pl.pallas_call(
        _fuse_kernel,
        out_shape=jax.ShapeDtypeStruct((N, Dn, L, C), jnp.float32),
        grid=(N, Dn),
        in_specs=[pl.BlockSpec((1, 1, L, C), lambda n, o: (n, o, 0, 0)),
                  pl.BlockSpec((1, C), lambda n, o: (0, 0)),
                  pl.BlockSpec((1, C), lambda n, o: (0, 0)),
                  pl.BlockSpec((1, 1, L, C), lambda n, o: (n, o, 0, 0)),
                  pl.BlockSpec((1, C), lambda n, o: (0, 0)),
                  pl.BlockSpec((1, C), lambda n, o: (0, 0))],
        out_specs=pl.BlockSpec((1, 1, L, C), lambda n, o: (n, o, 0, 0)),
        compiler_params=pltpu.CompilerParams(
            dimension_semantics=("parallel", "parallel"),
            vmem_limit_bytes=VMEM_LIMIT),
    )(y2, s2, b2, sc, ss, bs)


# ---------------------------------------------------------------------------
# Layout / glue helpers (tiny XLA ops only)
# ---------------------------------------------------------------------------
def build_plane_slab(v_ndhwc, c_out):
    """(N, Dd, Hh, Ww, C) -> bf16 slab (N, Dd, Hp*Wp_pad, c_out), interior mask, Wp_pad.

    In-plane zero padding of 1 plus 8-alignment padding of the row stride (so
    kh tap shifts inside the kernel are sublane-aligned).  Depth is NOT padded
    here; the conv kernel handles it with an index clamp + zero gate.
    """
    N, Dd, Hh, Ww, C = v_ndhwc.shape
    Hp = Hh + 2
    Wp_pad = _round_up(Ww + 2, 8)
    L = Hp * Wp_pad
    slab = jnp.pad(v_ndhwc, ((0, 0), (0, 0), (1, 1), (1, Wp_pad - Ww - 1),
                             (0, c_out - C)))
    slab = slab.reshape(N, Dd, L, c_out).astype(jnp.bfloat16)
    mask = jnp.pad(jnp.ones((Hh, Ww), jnp.float32),
                   ((1, 1), (1, Wp_pad - Ww - 1))).reshape(L, 1)
    return slab, mask, Wp_pad


def prep_tap_weights(w, cin_slab, cout_pad):
    """PyTorch (Cout, Cin, 3, 3, 3) -> bf16 (9, 3*cin_slab, cout_pad).

    Leading axis is kd*3 + kh; the K axis is kw-major over the (padded) input
    channels, matching the kernel's channel-concatenated kw grouping.
    """
    Cout, Cin = w.shape[0], w.shape[1]
    wt = jnp.transpose(w, (2, 3, 4, 1, 0))                # (kd, kh, kw, Cin, Cout)
    wt = jnp.pad(wt, ((0, 0), (0, 0), (0, 0),
                      (0, cin_slab - Cin), (0, cout_pad - Cout)))
    return wt.reshape(9, 3 * cin_slab, cout_pad).astype(jnp.bfloat16)


def _im2col_3d(x, ksize, stride, pad):
    """Used only for the strided conv1 (bf16 columns)."""
    # TODO(synk): the strided 3x3x3 conv still goes through a small XLA im2col
    # of the (already subsampled) bf16 input; a phase-decomposed in-kernel tap
    # gather would remove even this extra HBM pass.
    N, D, H, W, C = x.shape
    xp = jnp.pad(x, ((0, 0), (pad, pad), (pad, pad), (pad, pad), (0, 0)))
    Do = (D + 2 * pad - ksize) // stride + 1
    Ho = (H + 2 * pad - ksize) // stride + 1
    Wo = (W + 2 * pad - ksize) // stride + 1
    cols = []
    for kd in range(ksize):
        for kh in range(ksize):
            for kw in range(ksize):
                cols.append(xp[:, kd:kd + stride * Do:stride,
                               kh:kh + stride * Ho:stride,
                               kw:kw + stride * Wo:stride, :])
    cols = jnp.concatenate(cols, axis=-1)
    return cols.reshape(N * Do * Ho * Wo, ksize ** 3 * C), (Do, Ho, Wo)


def _bn_scale_shift(gamma, beta, ssum, ssq, count):
    mean = ssum / count
    var = ssq / count - mean * mean          # biased, matches PyTorch BN fwd
    scale = gamma / jnp.sqrt(var + EPS)
    shift = beta - mean * scale
    return scale.reshape(1, -1), shift.reshape(1, -1)


# ---------------------------------------------------------------------------
# BasicBlock3D forward
# ---------------------------------------------------------------------------
def basic_block_3d(x_ncdhw, params, stride):
    N, Cin, D, H, W = x_ncdhw.shape
    planes = params["w1"].shape[0]
    Cp = _round_up(planes, 128)              # lane-dense output channels
    Do = (D + 2 - 3) // stride + 1
    Ho = (H + 2 - 3) // stride + 1
    Wo = (W + 2 - 3) // stride + 1
    M1 = N * Do * Ho * Wo
    identity = (stride == 1 and Cin == planes)

    x_ndhwc = jnp.transpose(x_ncdhw.astype(jnp.float32), (0, 2, 3, 4, 1))

    def pad_c(v):
        return jnp.pad(v, (0, Cp - v.shape[0]))

    # ---- conv1 (+ fused batch stats) ----
    x_slab = None
    if stride == 1:
        cs1 = Cp if identity else Cin        # identity shortcut reuses the slab
        x_slab, mask, wp_pad = build_plane_slab(x_ndhwc, cs1)
        w1t = prep_tap_weights(params["w1"], cs1, Cp)
        ones_c = jnp.ones((1, cs1), jnp.float32)
        zeros_c = jnp.zeros((1, cs1), jnp.float32)
        y1_slab, s1sum, s1sq = tap_conv3d(x_slab, mask, wp_pad, w1t,
                                          ones_c, zeros_c, apply_relu=False)
    else:
        a1, _ = _im2col_3d(x_ndhwc.astype(jnp.bfloat16), 3, stride, 1)
        w1m = jnp.transpose(params["w1"], (2, 3, 4, 1, 0)).reshape(27 * Cin,
                                                                   planes)
        w1m = jnp.pad(w1m, ((0, 0), (0, Cp - planes)))
        y1f, s1sum, s1sq = matmul_stats(a1, w1m)
        y1v = y1f.reshape(N, Do, Ho, Wo, Cp)
        y1_slab, mask, wp_pad = build_plane_slab(y1v, Cp)

    scale1, shift1 = _bn_scale_shift(pad_c(params["g1"]), pad_c(params["b1"]),
                                     s1sum, s1sq, M1)

    # ---- conv2: BN1 + ReLU fused into its input transform ----
    w2t = prep_tap_weights(params["w2"], Cp, Cp)
    y2_slab, s2sum, s2sq = tap_conv3d(y1_slab, mask, wp_pad, w2t,
                                      scale1, shift1, apply_relu=True)
    scale2, shift2 = _bn_scale_shift(pad_c(params["g2"]), pad_c(params["b2"]),
                                     s2sum, s2sq, M1)

    # ---- shortcut ----
    if identity:
        sc_slab = x_slab                      # reuse, no extra HBM copy
        scale_s = jnp.ones((1, Cp), jnp.float32)
        shift_s = jnp.zeros((1, Cp), jnp.float32)
    else:
        xs = x_ndhwc[:, ::stride, ::stride, ::stride, :].reshape(M1, Cin)
        xs = xs.astype(jnp.bfloat16)
        wsm = params["ws"].reshape(planes, Cin).T
        wsm = jnp.pad(wsm, ((0, 0), (0, Cp - planes)))
        ysf, sssum, sssq = matmul_stats(xs, wsm)
        scale_s, shift_s = _bn_scale_shift(pad_c(params["gs"]),
                                           pad_c(params["bs"]),
                                           sssum, sssq, M1)
        ysv = ysf.reshape(N, Do, Ho, Wo, Cp)
        sc_slab, _, _ = build_plane_slab(ysv, Cp)

    # ---- fused BN2 + shortcut-BN + add + ReLU ----
    out_slab = fuse_bn_add_relu(y2_slab, scale2, shift2,
                                sc_slab, scale_s, shift_s)

    Hp = Ho + 2
    out = out_slab.reshape(N, Do, Hp, wp_pad, Cp)
    out = out[:, :, 1:1 + Ho, 1:1 + Wo, :planes]
    return jnp.transpose(out, (0, 4, 1, 2, 3))            # back to NCDHW


# ---------------------------------------------------------------------------
# Pure-JAX reference (mirrors the PyTorch forward, training-mode BN)
# ---------------------------------------------------------------------------
def reference_forward(x, params, stride):
    def conv(x, w, s, p):
        return lax.conv_general_dilated(
            x, w, window_strides=(s, s, s), padding=[(p, p)] * 3,
            dimension_numbers=("NCDHW", "OIDHW", "NCDHW"))

    def bn(y, g, b):
        mean = jnp.mean(y, axis=(0, 2, 3, 4), keepdims=True)
        var = jnp.mean((y - mean) ** 2, axis=(0, 2, 3, 4), keepdims=True)
        return ((y - mean) / jnp.sqrt(var + EPS)) * g.reshape(1, -1, 1, 1, 1) \
            + b.reshape(1, -1, 1, 1, 1)

    Cin, planes = x.shape[1], params["w1"].shape[0]
    out = jax.nn.relu(bn(conv(x, params["w1"], stride, 1),
                         params["g1"], params["b1"]))
    out = bn(conv(out, params["w2"], 1, 1), params["g2"], params["b2"])
    if stride != 1 or Cin != planes:
        sc = bn(conv(x, params["ws"], stride, 0), params["gs"], params["bs"])
    else:
        sc = x
    return jax.nn.relu(out + sc)


def make_params(key, in_planes, planes, with_shortcut):
    k1, k2, k3 = jax.random.split(key, 3)
    p = {
        "w1": 0.1 * jax.random.normal(k1, (planes, in_planes, 3, 3, 3),
                                      jnp.float32),
        "g1": jnp.ones((planes,), jnp.float32),
        "b1": jnp.zeros((planes,), jnp.float32),
        "w2": 0.1 * jax.random.normal(k2, (planes, planes, 3, 3, 3),
                                      jnp.float32),
        "g2": jnp.ones((planes,), jnp.float32),
        "b2": jnp.zeros((planes,), jnp.float32),
    }
    if with_shortcut:
        p["ws"] = 0.1 * jax.random.normal(k3, (planes, in_planes, 1, 1, 1),
                                          jnp.float32)
        p["gs"] = jnp.ones((planes,), jnp.float32)
        p["bs"] = jnp.zeros((planes,), jnp.float32)
    return p


if __name__ == "__main__":
    key = jax.random.PRNGKey(0)
    configs = [
        dict(N=2, Cin=4, D=8, H=8, W=8, planes=8, stride=2),  # strided + conv shortcut
        dict(N=2, Cin=8, D=8, H=8, W=8, planes=8, stride=1),  # identity shortcut
    ]
    for i, cfg in enumerate(configs):
        kp, kx, key = jax.random.split(key, 3)
        need_sc = cfg["stride"] != 1 or cfg["Cin"] != cfg["planes"]
        params = make_params(kp, cfg["Cin"], cfg["planes"], need_sc)
        x = jax.random.normal(
            kx, (cfg["N"], cfg["Cin"], cfg["D"], cfg["H"], cfg["W"]),
            jnp.float32)

        out = jax.block_until_ready(basic_block_3d(x, params, cfg["stride"]))
        ref = reference_forward(x, params, cfg["stride"])
        assert out.shape == ref.shape, (out.shape, ref.shape)
        max_err = float(jnp.max(jnp.abs(out - ref)))
        # bf16 MXU path + bf16 intermediate slabs -> loosened tolerance.
        assert jnp.allclose(out, ref, atol=5e-2, rtol=5e-2), (i, max_err)

    print("KERNEL_OK")
</pallas_src>

<mosaic_0001>
module attributes {stable_mosaic.version = 11 : i64} {
  func.func @_matmul_stats_kernel(%arg0: i32, %arg1: i32, %arg2: memref<128x108xbf16, #tpu.memory_space<vmem>>, %arg3: memref<108x128xbf16, #tpu.memory_space<vmem>>, %arg4: memref<128x128xbf16, #tpu.memory_space<vmem>>, %arg5: memref<1x1x128xf32, #tpu.memory_space<vmem>>, %arg6: memref<1x1x128xf32, #tpu.memory_space<vmem>>, %arg7: memref<128x128xf32, #tpu.memory_space<vmem>>) attributes {dimension_semantics = [#tpu.dimension_semantics<parallel>, #tpu.dimension_semantics<arbitrary>], iteration_bounds = array<i64: 1, 1>, scalar_prefetch = 0 : i64, scratch_operands = 1 : i64, tpu.core_type = #tpu.core_type<tc>, window_params = [{transform_indices = @transform_0, window_bounds = array<i64: 128, 108>}, {transform_indices = @transform_1, window_bounds = array<i64: 108, 128>}, {transform_indices = @transform_2, window_bounds = array<i64: 128, 128>}, {transform_indices = @transform_3, window_bounds = array<i64: 1, 1, 128>}, {transform_indices = @transform_4, window_bounds = array<i64: 1, 1, 128>}]} {
    %c0_i32 = arith.constant 0 : i32
    %0 = arith.cmpi eq, %arg1, %c0_i32 : i32
    %1 = arith.extui %0 : i1 to i32
    %c0_i32_0 = arith.constant 0 : i32
    %2 = arith.cmpi ne, %1, %c0_i32_0 : i32
    scf.if %2 {
      %cst_10 = arith.constant 0.000000e+00 : f32
      %12 = vector.broadcast %cst_10 : f32 to vector<128x128xf32>
      %c0_11 = arith.constant 0 : index
      %c0_12 = arith.constant 0 : index
      %13 = vector.load %arg7[%c0_11, %c0_12] : memref<128x128xf32, #tpu.memory_space<vmem>>, vector<128x128xf32>
      tpu.vector_store %arg7[%c0_11, %c0_12], %12 {strides = array<i32>} : memref<128x128xf32, #tpu.memory_space<vmem>>, vector<128x128xf32>,
    } else {
    }
    %c0 = arith.constant 0 : index
    %c0_1 = arith.constant 0 : index
    %3 = vector.load %arg7[%c0, %c0_1] : memref<128x128xf32, #tpu.memory_space<vmem>>, vector<128x128xf32>
    %c0_2 = arith.constant 0 : index
    %c0_3 = arith.constant 0 : index
    %4 = vector.load %arg2[%c0_2, %c0_3] : memref<128x108xbf16, #tpu.memory_space<vmem>>, vector<128x108xbf16>
    %c0_4 = arith.constant 0 : index
    %c0_5 = arith.constant 0 : index
    %5 = vector.load %arg3[%c0_4, %c0_5] : memref<108x128xbf16, #tpu.memory_space<vmem>>, vector<108x128xbf16>
    %cst = arith.constant dense<0.000000e+00> : vector<128x128xf32>
    %6 = tpu.matmul %4, %5, %cst {dimension_numbers = #tpu.dot_dimension_numbers<[1], [0], [0], [1], [0, 0, 1, 1], [], []>} : vector<128x108xbf16>, vector<108x128xbf16>, vector<128x128xf32> -> vector<128x128xf32>
    %7 = arith.addf %3, %6 : vector<128x128xf32>
    %c0_6 = arith.constant 0 : index
    %c0_7 = arith.constant 0 : index
    %8 = vector.load %arg7[%c0_6, %c0_7] : memref<128x128xf32, #tpu.memory_space<vmem>>, vector<128x128xf32>
    tpu.vector_store %arg7[%c0_6, %c0_7], %7 {strides = array<i32>} : memref<128x128xf32, #tpu.memory_space<vmem>>, vector<128x128xf32>,
    %c0_i32_8 = arith.constant 0 : i32
    %9 = arith.cmpi eq, %arg1, %c0_i32_8 : i32
    %10 = arith.extui %9 : i1 to i32
    %c0_i32_9 = arith.constant 0 : i32
    %11 = arith.cmpi ne, %10, %c0_i32_9 : i32
    scf.if %11 {
      %c0_10 = arith.constant 0 : index
      %c0_11 = arith.constant 0 : index
      %12 = vector.load %arg7[%c0_10, %c0_11] : memref<128x128xf32, #tpu.memory_space<vmem>>, vector<128x128xf32>
      %13 = arith.truncf %12 : vector<128x128xf32> to vector<128x128xbf16>
      %c0_12 = arith.constant 0 : index
      %c0_13 = arith.constant 0 : index
      %14 = vector.load %arg4[%c0_12, %c0_13] : memref<128x128xbf16, #tpu.memory_space<vmem>>, vector<128x128xbf16>
      tpu.vector_store %arg4[%c0_12, %c0_13], %13 {strides = array<i32>} : memref<128x128xbf16, #tpu.memory_space<vmem>>, vector<128x128xbf16>,
      %15 = arith.extf %13 : vector<128x128xbf16> to vector<128x128xf32>
      %cst_14 = arith.constant dense<0.000000e+00> : vector<128xf32>
      %16 = vector.multi_reduction <add>, %15, %cst_14 [0] : vector<128x128xf32> to vector<128xf32>
      %17 = vector.shape_cast %16 : vector<128xf32> to vector<1x128xf32>
      %c0_15 = arith.constant 0 : index
      %c0_16 = arith.constant 0 : index
      %c0_17 = arith.constant 0 : index
      %18 = vector.load %arg5[%c0_15, %c0_16, %c0_17] : memref<1x1x128xf32, #tpu.memory_space<vmem>>, vector<1x1x128xf32>
      %19 = vector.shape_cast %18 : vector<1x1x128xf32> to vector<1x128xf32>
      %20 = vector.shape_cast %17 : vector<1x128xf32> to vector<1x1x128xf32>
      tpu.vector_store %arg5[%c0_15, %c0_16, %c0_17], %20 {strides = array<i32>} : memref<1x1x128xf32, #tpu.memory_space<vmem>>, vector<1x1x128xf32>,
      %21 = arith.mulf %15, %15 : vector<128x128xf32>
      %cst_18 = arith.constant dense<0.000000e+00> : vector<128xf32>
      %22 = vector.multi_reduction <add>, %21, %cst_18 [0] : vector<128x128xf32> to vector<128xf32>
      %23 = vector.shape_cast %22 : vector<128xf32> to vector<1x128xf32>
      %c0_19 = arith.constant 0 : index
      %c0_20 = arith.constant 0 : index
      %c0_21 = arith.constant 0 : index
      %24 = vector.load %arg6[%c0_19, %c0_20, %c0_21] : memref<1x1x128xf32, #tpu.memory_space<vmem>>, vector<1x1x128xf32>
      %25 = vector.shape_cast %24 : vector<1x1x128xf32> to vector<1x128xf32>
      %26 = vector.shape_cast %23 : vector<1x128xf32> to vector<1x1x128xf32>
      tpu.vector_store %arg6[%c0_19, %c0_20, %c0_21], %26 {strides = array<i32>} : memref<1x1x128xf32, #tpu.memory_space<vmem>>, vector<1x1x128xf32>,
    } else {
    }
    return
  }
  func.func @transform_0(%arg0: i32, %arg1: i32) -> (i32, i32) {
    %c0_i32 = arith.constant 0 : i32
    return %arg0, %arg1 : i32, i32
  }
  func.func @transform_1(%arg0: i32, %arg1: i32) -> (i32, i32) {
    %c0_i32 = arith.constant 0 : i32
    %c0_i32_0 = arith.constant 0 : i32
    return %arg1, %c0_i32 : i32, i32
  }
  func.func @transform_2(%arg0: i32, %arg1: i32) -> (i32, i32) {
    %c0_i32 = arith.constant 0 : i32
    %c0_i32_0 = arith.constant 0 : i32
    return %arg0, %c0_i32 : i32, i32
  }
  func.func @transform_3(%arg0: i32, %arg1: i32) -> (i32, i32, i32) {
    %c0_i32 = arith.constant 0 : i32
    %c0_i32_0 = arith.constant 0 : i32
    %c0_i32_1 = arith.constant 0 : i32
    return %arg0, %c0_i32, %c0_i32_0 : i32, i32, i32
  }
  func.func @transform_4(%arg0: i32, %arg1: i32) -> (i32, i32, i32) {
    %c0_i32 = arith.constant 0 : i32
    %c0_i32_0 = arith.constant 0 : i32
    %c0_i32_1 = arith.constant 0 : i32
    return %arg0, %c0_i32, %c0_i32_0 : i32, i32, i32
  }
}

</mosaic_0001>

<bundles_post_ra>
// kernel: tpu_custom_call.1
= control target key start
LH: loop header
LB: loop body
LE: loop exit
PB: predicated region body
PF: predicated region fallthrough
CT: control target
= control target key end

     0   :  { %10 = vsyncpa [#allocation4], 0  ;;  %vm189_vm0 = vcmask 1045504   ;;  %vm164_vm1 = vcmask 883712   ;;  %s884_s0 = inlined_call_operand.vmem [shape: bf16[128,108], index: 0, kind: input, shape index: {}]   ;;  %s885_s1 = inlined_call_operand.vmem [shape: bf16[108,128], index: 1, kind: input, shape index: {}]   ;;  %s886_s2 = inlined_call_operand.hbm [shape: bf16[128,128], index: 2, kind: output, shape index: {0}]   ;;  %s887_s3 = inlined_call_operand.hbm [shape: f32[1,1,128], index: 3, kind: output, shape index: {1}]   ;;  %s888_s4 = inlined_call_operand.hbm [shape: f32[1,1,128], index: 4, kind: output, shape index: {2}]  }
   0x1   :  { %v708_v0 = vld [vmem:[%s885_s1 + $0x30] sm:$0x3f]   ;;  %v709_v1 = vld [vmem:[%s885_s1 + $0x28] sm:$0xff]   ;;  %v710_v3 = vld [vmem:[%s885_s1 + $0x20] sm:$0xff]  }
   0x2   :  { %701 = vmatprep.subr.msk.bf16.mxu0 %vm189_vm0, %v708_v0  ;;  %v191_v2 = vsel %vm189_vm0, %v708_v0, 0  ;;  %702 = vmatprep.subr.msk.bf16.mxu1 %vm189_vm0, %v708_v0  ;;  %v715_v4 = vld [vmem:[%s884_s0] sm:$0xff]   ;;  %v711_v5 = vld [vmem:[%s885_s1 + $0x18] sm:$0xff]   ;;  %v712_v7 = vld [vmem:[%s885_s1 + $0x10] sm:$0xff]  }
   0x3   :  { %658 = vmatpush3.bf16.msra.mxu0 %v191_v2  ;;  %694 = vmatpush3.bf16.msra.mxu1 %v191_v2  ;;  %v719_v6 = vld [vmem:[%s884_s0 + $0x20] sm:$0xff]  }
   0x4   :  { %659 = vmatprep.subr.bf16.mxu0 %v709_v1  ;;  %688 = vmatprep.subr.bf16.mxu1 %v709_v1 }
   0x5   :  { %671 = vmatprep.mubr.msk.bf16.mxu0 %vm164_vm1, %v715_v4  ;;  %679 = vmatprep.mubr.msk.bf16.mxu1 %vm164_vm1, %v719_v6 }
   0x7   :  { %660 = vmatpush3.bf16.msra.mxu0 %v709_v1  ;;  %695 = vmatpush3.bf16.msra.mxu1 %v709_v1 }
   0x8   :  { %661 = vmatprep.subr.bf16.mxu0 %v710_v3  ;;  %689 = vmatprep.subr.bf16.mxu1 %v710_v3 }
   0xb   :  { %662 = vmatpush3.bf16.msra.mxu0 %v710_v3  ;;  %696 = vmatpush3.bf16.msra.mxu1 %v710_v3 }
   0xc   :  { %663 = vmatprep.subr.bf16.mxu0 %v711_v5  ;;  %690 = vmatprep.subr.bf16.mxu1 %v711_v5 }
   0xf   :  { %664 = vmatpush3.bf16.msra.mxu0 %v711_v5  ;;  %697 = vmatpush3.bf16.msra.mxu1 %v711_v5 }
  0x10   :  { %11 = vsyncpa [#allocation6], 0  ;;  %665 = vmatprep.subr.bf16.mxu0 %v712_v7  ;;  %v713_v8 = vld [vmem:[%s885_s1 + $0x8] sm:$0xff]   ;;  %691 = vmatprep.subr.bf16.mxu1 %v712_v7  ;;  %v714_v9 = vld [vmem:[%s885_s1] sm:$0xff]  }
  0x11   :  { %v716_v10 = vld [vmem:[%s884_s0 + $0x8] sm:$0xff]   ;;  %v717_v12 = vld [vmem:[%s884_s0 + $0x10] sm:$0xff]   ;;  %v718_v14 = vld [vmem:[%s884_s0 + $0x18] sm:$0xff]  }
  0x12   :  { %v720_v11 = vld [vmem:[%s884_s0 + $0x28] sm:$0xff]   ;;  %v721_v13 = vld [vmem:[%s884_s0 + $0x30] sm:$0xff]   ;;  %v722_v15 = vld [vmem:[%s884_s0 + $0x38] sm:$0xff]   ;;  %s787_s0 = smov [#allocation3]  }
  0x13   :  { %666 = vmatpush3.bf16.msra.mxu0 %v712_v7  ;;  %698 = vmatpush3.bf16.msra.mxu1 %v712_v7  ;;  %s502_s18 = sshll.u32 %s787_s0, 4  ;;  %s503_s18 = int_to_ptr.vmem [resolvable:$true] %s502_s18 }
  0x14   :  { %667 = vmatprep.subr.bf16.mxu0 %v713_v8  ;;  %692 = vmatprep.subr.bf16.mxu1 %v713_v8  ;;  %s723_s19 = scalar_lea.vmem %s503_s18, 1024  ;;  %p728_p1 = scmp.lt.s32.totalorder %s503_s18, %s503_s18 }
  0x15   :  { %p724_p0 = scmp.ne.s32.totalorder %s503_s18, %s723_s19  ;;  %p729_p2 = scmp.lt.s32.totalorder %s723_s19, %s723_s19 }
  0x17   :  { %668 = vmatpush3.bf16.msra.mxu0 %v713_v8  ;;  %699 = vmatpush3.bf16.msra.mxu1 %v713_v8  ;;  %p730_p3 = por %p729_p2, %p728_p1 }
  0x18   :  { %669 = vmatprep.subr.bf16.mxu0 %v714_v9  ;;  %693 = vmatprep.subr.bf16.mxu1 %v714_v9 }
  0x19   :  { %p731_p4 = pnand %p730_p3, %p724_p0 }
  0x1b   :  { %670 = vmatpush3.bf16.msra.mxu0 %v714_v9  ;;  %700 = vmatpush3.bf16.msra.mxu1 %v714_v9 }
  0x1e   :  { %672 = vmatmul.mubr.msk.bf16.vlgmr.msra.gmra.mxu0 %vm164_vm1, %v716_v10  ;;  %680 = vmatmul.mubr.msk.bf16.vlgmr.msra.gmra.mxu1 %vm164_vm1, %v720_v11 }
  0x1f   :  { %675 = vmatprep.mubr.msk.bf16.mxu0 %vm164_vm1, %v717_v12  ;;  %683 = vmatprep.mubr.msk.bf16.mxu1 %vm164_vm1, %v721_v13 }
  0x26   :  { %676 = vmatmul.mubr.msk.bf16.gmra.mxu0 %vm164_vm1, %v718_v14  ;;  %684 = vmatmul.mubr.msk.bf16.gmra.mxu1 %vm164_vm1, %v722_v15 }
  0xde   :  { %v673_v16 = vpop.f32.mrf.mxu0  ;;  %v681_v17 = vpop.f32.mrf.mxu1 }
  0xe0   :  { %v227_v18 = vpop.f32.mrf.mxu0  ;;  %v259_v19 = vpop.f32.mrf.mxu1 }
  0xe2   :  { %v674_v20 = vpop.f32.mrf.mxu0  ;;  %v682_v21 = vpop.f32.mrf.mxu1 }
  0xe3   :  { %v342_v22 = vpack.c.bf16 %v674_v20, %v673_v16  ;;  %v870_v23 = vpack.c.bf16 %v682_v21, %v681_v17 }
  0xe4   :  { %v230_v24 = vpop.f32.mrf.mxu0  ;;  %v262_v25 = vpop.f32.mrf.mxu1 }
  0xe5   :  { %635 = vst [vmem:[#allocation3 + $0x8] sm:$0xff] %v342_v22   ;;  %v341_v26 = vpack.c.bf16 %v230_v24, %v227_v18  ;;  %639 = vst [vmem:[#allocation3 + $0x28] sm:$0xff] %v870_v23   ;;  %v423_v27 = vunpack.c.l.bf16 %v342_v22  ;;  %v345_v29 = vpack.c.bf16 %v262_v25, %v259_v19  ;;  %v424_v38 = vunpack.c.h.bf16 %v342_v22 }
  0xe6   :  { %v677_v28 = vpop.f32.mrf.mxu0  ;;  %v685_v30 = vpop.f32.mrf.mxu1 }
  0xe7   :  { %599 = vst [vmem:[#allocation3] sm:$0xff] %v341_v26   ;;  %v421_v31 = vunpack.c.l.bf16 %v341_v26  ;;  %v422_v32 = vunpack.c.h.bf16 %v341_v26  ;;  %638 = vst [vmem:[#allocation3 + $0x20] sm:$0xff] %v345_v29   ;;  %v461_v39 = vmul.f32 %v423_v27, %v423_v27  ;;  %v462_v51 = vmul.f32 %v424_v38, %v424_v38 }
  0xe8   :  { %v243_v33 = vpop.f32.mrf.mxu0  ;;  %v275_v34 = vpop.f32.mrf.mxu1 }
  0xe9   :  { %v437_v35 = vadd.f32 %v422_v32, %v421_v31  ;;  %v459_v36 = vmul.f32 %v421_v31, %v421_v31  ;;  %v460_v37 = vmul.f32 %v422_v32, %v422_v32 }
  0xea   :  { %v678_v40 = vpop.f32.mrf.mxu0  ;;  %v686_v41 = vpop.f32.mrf.mxu1 }
  0xeb   :  { %v438_v42 = vadd.f32 %v437_v35, %v423_v27  ;;  %v475_v43 = vadd.f32 %v460_v37, %v459_v36  ;;  %v344_v44 = vpack.c.bf16 %v678_v40, %v677_v28  ;;  %v348_v45 = vpack.c.bf16 %v686_v41, %v685_v30 }
  0xec   :  { %v246_v46 = vpop.f32.mrf.mxu0  ;;  %v278_v47 = vpop.f32.mrf.mxu1 }
  0xed   :  { %v476_v48 = vadd.f32 %v475_v43, %v461_v39  ;;  %637 = vst [vmem:[#allocation3 + $0x18] sm:$0xff] %v344_v44   ;;  %v343_v49 = vpack.c.bf16 %v246_v46, %v243_v33  ;;  %641 = vst [vmem:[#allocation3 + $0x38] sm:$0xff] %v348_v45   ;;  %v347_v50 = vpack.c.bf16 %v278_v47, %v275_v34  ;;  %v427_v55 = vunpack.c.l.bf16 %v344_v44 }
  0xee   :  { %v439_v54 = vadd.f32 %v438_v42, %v424_v38 }
  0xef   :  { %636 = vst [vmem:[#allocation3 + $0x10] sm:$0xff] %v343_v49   ;;  %v425_v52 = vunpack.c.l.bf16 %v343_v49  ;;  %v426_v53 = vunpack.c.h.bf16 %v343_v49  ;;  %640 = vst [vmem:[#allocation3 + $0x30] sm:$0xff] %v347_v50   ;;  %v477_v58 = vadd.f32 %v476_v48, %v462_v51 }
  0xf1   :  { %v440_v56 = vadd.f32 %v439_v54, %v425_v52  ;;  %v463_v57 = vmul.f32 %v425_v52, %v425_v52 }
  0xf2   :  { %734 = shalt.err (!%p731_p4)
}
  0xf3   :  { %s788_s20 = smov 64   ;;  %s789_s21 = smov 4   ;;  %v428_v59 = vunpack.c.h.bf16 %v344_v44  ;;  %v441_v60 = vadd.f32 %v440_v56, %v426_v53  ;;  %v464_v61 = vmul.f32 %v426_v53, %v426_v53  ;;  %v478_v62 = vadd.f32 %v477_v58, %v463_v57 }
  0xf4   :  { %508 = dma.vmem_to_hbm [thread:$0]  %s503_s18, 1024, %s886_s2, [#allocation4], %s788_s20, %s788_s20, %s789_s21   ;;  %v465_v63 = vmul.f32 %v427_v55, %v427_v55  ;;  %v429_v2 = vunpack.c.l.bf16 %v345_v29  ;;  %v430_v5 = vunpack.c.h.bf16 %v345_v29  ;;  %v431_v7 = vunpack.c.l.bf16 %v870_v23 }
  0xf5   :  { %v442_v0 = vadd.f32 %v441_v60, %v427_v55  ;;  %v479_v1 = vadd.f32 %v478_v62, %v464_v61  ;;  %v466_v3 = vmul.f32 %v428_v59, %v428_v59  ;;  %v432_v11 = vunpack.c.h.bf16 %v870_v23  ;;  %s790_s2 = smov [#allocation5]   ;;  %s791_s25 = smov [#allocation7]  }
  0xf6   :  { %v467_v9 = vmul.f32 %v429_v2, %v429_v2  ;;  %v468_v13 = vmul.f32 %v430_v5, %v430_v5  ;;  %v469_v15 = vmul.f32 %v431_v7, %v431_v7  ;;  %v433_v18 = vunpack.c.l.bf16 %v347_v50  ;;  %s515_s24 = sshll.u32 %s790_s2, 4  ;;  %s525_s26 = sshll.u32 %s791_s25, 4  ;;  %s516_s24 = int_to_ptr.vmem [resolvable:$true] %s515_s24  ;;  %s526_s26 = int_to_ptr.vmem [resolvable:$true] %s525_s26 }
  0xf7   :  { %v480_v4 = vadd.f32 %v479_v1, %v465_v63  ;;  %v443_v6 = vadd.f32 %v442_v0, %v428_v59  ;;  %v470_v19 = vmul.f32 %v432_v11, %v432_v11  ;;  %v434_v21 = vunpack.c.h.bf16 %v347_v50  ;;  %s743_s27 = scalar_lea.vmem %s516_s24, 16  ;;  %s747_s28 = scalar_lea.vmem %s516_s24, 32 }
  0xf8   :  { %v435_v24 = vunpack.c.l.bf16 %v348_v45  ;;  %v471_v26 = vmul.f32 %v433_v18, %v433_v18  ;;  %v436_v28 = vunpack.c.h.bf16 %v348_v45  ;;  %p744_p5 = scmp.ne.s32.totalorder %s516_s24, %s743_s27  ;;  %p748_p6 = scmp.lt.s32.totalorder %s516_s24, %s516_s24 }
  0xf9   :  { %v444_v8 = vadd.f32 %v443_v6, %v429_v2  ;;  %v481_v10 = vadd.f32 %v480_v4, %v466_v3  ;;  %v472_v30 = vmul.f32 %v434_v21, %v434_v21  ;;  %p749_p7 = scmp.lt.s32.totalorder %s747_s28, %s743_s27 }
  0xfa   :  { %v473_v23 = vmul.f32 %v435_v24, %v435_v24  ;;  %v474_v34 = vmul.f32 %v436_v28, %v436_v28 }
  0xfb   :  { %v445_v12 = vadd.f32 %v444_v8, %v430_v5  ;;  %v482_v14 = vadd.f32 %v481_v10, %v467_v9  ;;  %p750_p8 = por %p749_p7, %p748_p6 }
  0xfd   :  { %v446_v16 = vadd.f32 %v445_v12, %v431_v7  ;;  %v483_v17 = vadd.f32 %v482_v14, %v468_v13  ;;  %p751_p9 = pnand %p750_p8, %p744_p5 }
  0xff   :  { %v484_v20 = vadd.f32 %v483_v17, %v469_v15  ;;  %v447_v22 = vadd.f32 %v446_v16, %v432_v11 }
 0x101   :  { %v448_v25 = vadd.f32 %v447_v22, %v433_v18  ;;  %v485_v27 = vadd.f32 %v484_v20, %v470_v19 }
 0x103   :  { %v449_v29 = vadd.f32 %v448_v25, %v434_v21  ;;  %v486_v31 = vadd.f32 %v485_v27, %v471_v26 }
 0x105   :  { %v450_v32 = vadd.f32 %v449_v29, %v435_v24  ;;  %v487_v33 = vadd.f32 %v486_v31, %v472_v30 }
 0x107   :  { %v451_v35 = vadd.f32 %v450_v32, %v436_v28  ;;  %v488_v36 = vadd.f32 %v487_v33, %v473_v23 }
 0x109   :  { %v452_v37 = vrot.slane %v451_v35, 4  ;;  %v489_v38 = vadd.f32 %v488_v36, %v474_v34 }
 0x10b   :  { %v453_v39 = vadd.f32 %v452_v37, %v451_v35  ;;  %v490_v40 = vrot.slane %v489_v38, 4 }
 0x10d   :  { %v454_v41 = vrot.slane %v453_v39, 2  ;;  %v491_v42 = vadd.f32 %v490_v40, %v489_v38 }
 0x10f   :  { %v455_v43 = vadd.f32 %v454_v41, %v453_v39  ;;  %v492_v44 = vrot.slane %v491_v42, 2 }
 0x111   :  { %v456_v45 = vrot.slane %v455_v43, 1  ;;  %v493_v46 = vadd.f32 %v492_v44, %v491_v42 }
 0x113   :  { %v457_v47 = vadd.f32 %v456_v45, %v455_v43  ;;  %v494_v48 = vrot.slane %v493_v46, 1 }
 0x115   :  { %458 = vst [vmem:[#allocation5] sm:$0x1] %v457_v47  ;;  %v495_v49 = vadd.f32 %v494_v48, %v493_v46 }
 0x116   :  { %754 = shalt.err (!%p751_p9)
}
 0x117   :  { %518 = dma.vmem_to_hbm [thread:$0]  %s516_s24, 16, %s887_s3, [#allocation6]   ;;  %496 = vst [vmem:[#allocation7] sm:$0x1] %v495_v49 }
 0x118   :  { %s763_s5 = scalar_lea.vmem %s526_s26, 16  ;;  %s767_s6 = scalar_lea.vmem %s526_s26, 32 }
 0x119   :  { %p764_p10 = scmp.ne.s32.totalorder %s526_s26, %s763_s5  ;;  %p768_p11 = scmp.lt.s32.totalorder %s526_s26, %s526_s26 }
 0x11a   :  { %p769_p12 = scmp.lt.s32.totalorder %s767_s6, %s763_s5 }
 0x11c   :  { %p770_p13 = por %p769_p12, %p768_p11 }
 0x11e   :  { %p771_p0 = pnand %p770_p13, %p764_p10 }
 0x120   :  { %774 = shalt.err (!%p771_p0)
}
 0x121   :  { %528 = dma.vmem_to_hbm [thread:$0]  %s526_s26, 16, %s888_s4, [#allocation6]  }
 0x122   :  { %783 = dma.done.wait [#allocation4], 1024  }
 0x123   :  { %784 = vsyncadd [#allocation4], 4294966272 }
 0x124   :  { %785 = dma.done.wait [#allocation6], 32  }
 0x125   :  { %786 = vsyncadd [#allocation6], 4294967264 }
 0x126   :  { %538 = vsyncpa [#allocation4], 1 }
 0x127   :  { %539 = vsyncpa [#allocation6], 1 }

</bundles_post_ra>
